<compile_context>
chip_gen: v7x
topology: tpu7x:2x2x1
jax: 0.10.0
libtpu: 0.0.40
codegen_flags: <defaults>
</compile_context>

<pallas_src>
import functools

import jax
import jax.numpy as jnp
import numpy as np
from jax import lax
from jax.experimental import pallas as pl
from jax.experimental.pallas import tpu as pltpu


def _round_up(x: int, m: int) -> int:
    return ((x + m - 1) // m) * m


def _cdiv(a: int, b: int) -> int:
    return -(-a // b)


def _vmem_capacity_bytes() -> int:
    """Physical VMEM per TensorCore; conservative 64 MiB fallback."""
    try:
        cap = int(pltpu.get_tpu_info().vmem_capacity_bytes)
        if cap > 0:
            return cap
    except Exception:
        pass
    return 64 << 20


def _ofdm_mod_kernel(xr_ref, xi_ref, wr_ref, wsum_ref, wdiff_ref, or_ref, oi_ref):
    """Gauss 3-matmul complex matmul O = X @ W on real/imag planes.

      t  = (xr + xi) @ wr
      or = t - xi @ (wr + wi)
      oi = t + xr @ (wi - wr)
    """
    xr = xr_ref[...]
    xi = xi_ref[...]
    t = jnp.dot(xr + xi, wr_ref[...],
                preferred_element_type=jnp.float32,
                precision=lax.Precision.HIGHEST)
    or_ref[...] = t - jnp.dot(xi, wsum_ref[...],
                              preferred_element_type=jnp.float32,
                              precision=lax.Precision.HIGHEST)
    oi_ref[...] = t + jnp.dot(xr, wdiff_ref[...],
                              preferred_element_type=jnp.float32,
                              precision=lax.Precision.HIGHEST)


def _build_shifted_idft_cp_matrices(fft_size: int, cp_len: int, n_out_pad: int):
    """ifftshift + normalized IDFT + CP folded into one matrix, Gauss-split,
    zero-padded to a lane-aligned output width."""
    n = fft_size
    k = np.arange(n)
    m = (k - n // 2) % n                                            # fold ifftshift
    t = np.arange(n)
    w = np.exp(2j * np.pi * np.outer(m, t) / n) / np.sqrt(n)        # [n, n]
    w_ext = np.concatenate([w[:, n - cp_len:], w], axis=1)          # [n, n+cp]
    pad_cols = n_out_pad - (n + cp_len)
    if pad_cols > 0:
        w_ext = np.pad(w_ext, ((0, 0), (0, pad_cols)))              # zero lanes
    wr = w_ext.real.astype(np.float32)
    wi = w_ext.imag.astype(np.float32)
    return (
        jnp.asarray(wr),            # wr
        jnp.asarray(wr + wi),       # wr + wi
        jnp.asarray(wi - wr),       # wi - wr
    )


def _working_set_bytes(tm: int, tn: int, fft_size: int, w_bufs: int) -> int:
    w = 3 * fft_size * tn * 4 * w_bufs          # three W planes
    x = 2 * tm * fft_size * 4 * 2               # xr, xi (double-buffered)
    o = 2 * tm * tn * 4 * 2                     # or, oi (double-buffered)
    return w + x + o


def _choose_tiles(fft_size: int, n_out: int, m_rows: int,
                  budget: int, tm_cap: int):
    """Pick (tm, grid_m, tn, grid_n) minimizing padding while fitting VMEM."""
    n_units = _round_up(n_out, 128) // 128      # 128-lane output columns

    # Smallest grid_m keeping tm <= tm_cap, then minimal-padding tm.
    grid_m = max(1, _cdiv(m_rows, tm_cap))
    tm = _round_up(_cdiv(m_rows, grid_m), 8)

    # Grow grid_n until the working set fits (or tn bottoms out at 128 lanes).
    grid_n = 1
    while True:
        tn = _cdiv(n_units, grid_n) * 128
        w_bufs = 1 if grid_n == 1 else 2        # W single-buffered when resident
        if _working_set_bytes(tm, tn, fft_size, w_bufs) <= budget or tn == 128:
            break
        grid_n += 1

    # Fallback for very large fft_size: shrink the M tile.
    while _working_set_bytes(tm, tn, fft_size, w_bufs) > budget and tm > 8:
        grid_m += 1
        tm = _round_up(_cdiv(m_rows, grid_m), 8)

    # Megacore: guarantee >=2 parallel grid points (v7x has 2 TCs).
    if grid_m * grid_n == 1:
        grid_m = 2
        tm = _round_up(_cdiv(m_rows, 2), 8)

    return tm, grid_m, tn, grid_n


@functools.partial(jax.jit, static_argnames=("cyclic_prefix_length",))
def ofdm_modulate(inputs: jax.Array, cyclic_prefix_length: int = 0) -> jax.Array:
    """inputs: [..., num_ofdm_symbols, fft_size] complex64
    returns: [..., num_ofdm_symbols*(fft_size+cyclic_prefix_length)] complex64
    """
    *lead, num_sym, fft_size = inputs.shape
    cp = int(cyclic_prefix_length)
    assert cp >= 0
    assert cp <= fft_size

    n_out = fft_size + cp
    m_rows = int(np.prod(lead, dtype=np.int64)) * num_sym if lead else num_sym
    m_rows = max(int(m_rows), 1)

    vmem_cap = _vmem_capacity_bytes()
    budget = int(0.80 * vmem_cap)               # tile-selection budget
    tm_cap = 512 if vmem_cap >= (100 << 20) else 256   # v5e/v6e vs v7x

    tm, grid_m, tn, grid_n = _choose_tiles(fft_size, n_out, m_rows, budget, tm_cap)
    m_pad = grid_m * tm
    n_out_pad = grid_n * tn

    wr, wsum, wdiff = _build_shifted_idft_cp_matrices(fft_size, cp, n_out_pad)

    x = inputs.reshape(m_rows, fft_size)
    xr = jnp.real(x).astype(jnp.float32)
    xi = jnp.imag(x).astype(jnp.float32)
    if m_pad != m_rows:
        row_pad = ((0, m_pad - m_rows), (0, 0))
        xr = jnp.pad(xr, row_pad)
        xi = jnp.pad(xi, row_pad)

    # Compiler VMEM limit: physical capacity minus ~10% headroom (never above).
    vmem_limit = int(0.90 * vmem_cap)

    flops = 3 * 2 * m_pad * fft_size * n_out_pad        # 3 real matmuls
    bytes_accessed = 4 * (2 * m_pad * fft_size
                          + 3 * fft_size * n_out_pad
                          + 2 * m_pad * n_out_pad)

    # Grid: N outer, M inner -> the W column tile is held across the whole M
    # sweep (Pallas skips re-DMA when the block index is unchanged).
    x_spec = pl.BlockSpec((tm, fft_size), lambda j, i: (i, 0))
    if grid_n == 1:
        # Grid-invariant W: single-buffer (double-buffering it is pure waste).
        w_spec = pl.BlockSpec((fft_size, tn), lambda j, i: (0, 0),
                              pipeline_mode=pl.Buffered(1))
    else:
        w_spec = pl.BlockSpec((fft_size, tn), lambda j, i: (0, j))
    o_spec = pl.BlockSpec((tm, tn), lambda j, i: (i, j))

    out_r, out_i = pl.pallas_call(
        _ofdm_mod_kernel,
        out_shape=(
            jax.ShapeDtypeStruct((m_pad, n_out_pad), jnp.float32),
            jax.ShapeDtypeStruct((m_pad, n_out_pad), jnp.float32),
        ),
        grid_spec=pltpu.PrefetchScalarGridSpec(
            num_scalar_prefetch=0,
            grid=(grid_n, grid_m),
            in_specs=[x_spec, x_spec, w_spec, w_spec, w_spec],
            out_specs=(o_spec, o_spec),
        ),
        compiler_params=pltpu.CompilerParams(
            dimension_semantics=("parallel", "parallel"),
            vmem_limit_bytes=vmem_limit,
        ),
        cost_estimate=pl.CostEstimate(
            flops=flops, transcendentals=0, bytes_accessed=bytes_accessed),
    )(xr, xi, wr, wsum, wdiff)

    out = lax.complex(out_r[:m_rows, :n_out], out_i[:m_rows, :n_out])
    out = out.astype(jnp.complex64)
    return out.reshape(*lead, num_sym * n_out)


def _reference(inputs, cp_len):
    """Pure-JAX reference replicating the PyTorch forward."""
    n = inputs.shape[-1]
    y = jnp.fft.ifftshift(inputs, axes=-1)
    x = jnp.sqrt(n).astype(jnp.complex64) * jnp.fft.ifft(y, axis=-1)
    cp = x[..., n - cp_len:]
    x = jnp.concatenate([cp, x], axis=-1)
    return x.reshape(*x.shape[:-2], x.shape[-2] * x.shape[-1]).astype(jnp.complex64)


if __name__ == "__main__":
    key = jax.random.PRNGKey(0)
    batch, num_ofdm_symbols, fft_size = 2, 4, 16
    cyclic_prefix_length = 4

    kr, ki = jax.random.split(key)
    real = jax.random.normal(kr, (batch, num_ofdm_symbols, fft_size), dtype=jnp.float32)
    imag = jax.random.normal(ki, (batch, num_ofdm_symbols, fft_size), dtype=jnp.float32)
    rg = (real + 1j * imag).astype(jnp.complex64)

    out = ofdm_modulate(rg, cyclic_prefix_length)
    out = jax.block_until_ready(out)

    expected_shape = (batch, num_ofdm_symbols * (fft_size + cyclic_prefix_length))
    assert out.shape == expected_shape, (out.shape, expected_shape)
    assert out.dtype == jnp.complex64

    ref = _reference(rg, cyclic_prefix_length)
    np.testing.assert_allclose(np.asarray(out), np.asarray(ref), rtol=1e-4, atol=1e-4)

    print("KERNEL_OK")
</pallas_src>

<mosaic_0001>
module attributes {stable_mosaic.version = 11 : i64} {
  func.func @_ofdm_mod_kernel(%arg0: i32, %arg1: i32, %arg2: memref<8x16xf32, #tpu.memory_space<vmem>>, %arg3: memref<8x16xf32, #tpu.memory_space<vmem>>, %arg4: memref<16x128xf32, #tpu.memory_space<vmem>>, %arg5: memref<16x128xf32, #tpu.memory_space<vmem>>, %arg6: memref<16x128xf32, #tpu.memory_space<vmem>>, %arg7: memref<8x128xf32, #tpu.memory_space<vmem>>, %arg8: memref<8x128xf32, #tpu.memory_space<vmem>>) attributes {dimension_semantics = [#tpu.dimension_semantics<parallel>, #tpu.dimension_semantics<parallel>], iteration_bounds = array<i64: 1, 2>, scalar_prefetch = 0 : i64, scratch_operands = 0 : i64, tpu.core_type = #tpu.core_type<tc>, window_params = [{transform_indices = @transform_0, window_bounds = array<i64: 8, 16>}, {transform_indices = @transform_1, window_bounds = array<i64: 8, 16>}, {pipeline_mode = #tpu.pipeline_mode<synchronous>, transform_indices = @transform_2, window_bounds = array<i64: 16, 128>}, {pipeline_mode = #tpu.pipeline_mode<synchronous>, transform_indices = @transform_3, window_bounds = array<i64: 16, 128>}, {pipeline_mode = #tpu.pipeline_mode<synchronous>, transform_indices = @transform_4, window_bounds = array<i64: 16, 128>}, {transform_indices = @transform_5, window_bounds = array<i64: 8, 128>}, {transform_indices = @transform_6, window_bounds = array<i64: 8, 128>}]} {
    %c0 = arith.constant 0 : index
    %c0_0 = arith.constant 0 : index
    %0 = vector.load %arg2[%c0, %c0_0] : memref<8x16xf32, #tpu.memory_space<vmem>>, vector<8x16xf32>
    %c0_1 = arith.constant 0 : index
    %c0_2 = arith.constant 0 : index
    %1 = vector.load %arg3[%c0_1, %c0_2] : memref<8x16xf32, #tpu.memory_space<vmem>>, vector<8x16xf32>
    %2 = arith.addf %0, %1 : vector<8x16xf32>
    %c0_3 = arith.constant 0 : index
    %c0_4 = arith.constant 0 : index
    %3 = vector.load %arg4[%c0_3, %c0_4] : memref<16x128xf32, #tpu.memory_space<vmem>>, vector<16x128xf32>
    %cst = arith.constant dense<0.000000e+00> : vector<8x128xf32>
    %4 = tpu.matmul %2, %3, %cst {dimension_numbers = #tpu.dot_dimension_numbers<[1], [0], [0], [1], [0, 0, 1, 1], [], []>, precision = #tpu.contract_precision<fp32>} : vector<8x16xf32>, vector<16x128xf32>, vector<8x128xf32> -> vector<8x128xf32>
    %c0_5 = arith.constant 0 : index
    %c0_6 = arith.constant 0 : index
    %5 = vector.load %arg5[%c0_5, %c0_6] : memref<16x128xf32, #tpu.memory_space<vmem>>, vector<16x128xf32>
    %cst_7 = arith.constant dense<0.000000e+00> : vector<8x128xf32>
    %6 = tpu.matmul %1, %5, %cst_7 {dimension_numbers = #tpu.dot_dimension_numbers<[1], [0], [0], [1], [0, 0, 1, 1], [], []>, precision = #tpu.contract_precision<fp32>} : vector<8x16xf32>, vector<16x128xf32>, vector<8x128xf32> -> vector<8x128xf32>
    %7 = arith.subf %4, %6 : vector<8x128xf32>
    %c0_8 = arith.constant 0 : index
    %c0_9 = arith.constant 0 : index
    %8 = vector.load %arg7[%c0_8, %c0_9] : memref<8x128xf32, #tpu.memory_space<vmem>>, vector<8x128xf32>
    tpu.vector_store %arg7[%c0_8, %c0_9], %7 {strides = array<i32>} : memref<8x128xf32, #tpu.memory_space<vmem>>, vector<8x128xf32>,
    %c0_10 = arith.constant 0 : index
    %c0_11 = arith.constant 0 : index
    %9 = vector.load %arg6[%c0_10, %c0_11] : memref<16x128xf32, #tpu.memory_space<vmem>>, vector<16x128xf32>
    %cst_12 = arith.constant dense<0.000000e+00> : vector<8x128xf32>
    %10 = tpu.matmul %0, %9, %cst_12 {dimension_numbers = #tpu.dot_dimension_numbers<[1], [0], [0], [1], [0, 0, 1, 1], [], []>, precision = #tpu.contract_precision<fp32>} : vector<8x16xf32>, vector<16x128xf32>, vector<8x128xf32> -> vector<8x128xf32>
    %11 = arith.addf %4, %10 : vector<8x128xf32>
    %c0_13 = arith.constant 0 : index
    %c0_14 = arith.constant 0 : index
    %12 = vector.load %arg8[%c0_13, %c0_14] : memref<8x128xf32, #tpu.memory_space<vmem>>, vector<8x128xf32>
    tpu.vector_store %arg8[%c0_13, %c0_14], %11 {strides = array<i32>} : memref<8x128xf32, #tpu.memory_space<vmem>>, vector<8x128xf32>,
    return
  }
  func.func @transform_0(%arg0: i32, %arg1: i32) -> (i32, i32) {
    %c0_i32 = arith.constant 0 : i32
    %c0_i32_0 = arith.constant 0 : i32
    return %arg1, %c0_i32 : i32, i32
  }
  func.func @transform_1(%arg0: i32, %arg1: i32) -> (i32, i32) {
    %c0_i32 = arith.constant 0 : i32
    %c0_i32_0 = arith.constant 0 : i32
    return %arg1, %c0_i32 : i32, i32
  }
  func.func @transform_2(%arg0: i32, %arg1: i32) -> (i32, i32) {
    %c0_i32 = arith.constant 0 : i32
    %c0_i32_0 = arith.constant 0 : i32
    %c0_i32_1 = arith.constant 0 : i32
    return %c0_i32, %c0_i32_0 : i32, i32
  }
  func.func @transform_3(%arg0: i32, %arg1: i32) -> (i32, i32) {
    %c0_i32 = arith.constant 0 : i32
    %c0_i32_0 = arith.constant 0 : i32
    %c0_i32_1 = arith.constant 0 : i32
    return %c0_i32, %c0_i32_0 : i32, i32
  }
  func.func @transform_4(%arg0: i32, %arg1: i32) -> (i32, i32) {
    %c0_i32 = arith.constant 0 : i32
    %c0_i32_0 = arith.constant 0 : i32
    %c0_i32_1 = arith.constant 0 : i32
    return %c0_i32, %c0_i32_0 : i32, i32
  }
  func.func @transform_5(%arg0: i32, %arg1: i32) -> (i32, i32) {
    %c0_i32 = arith.constant 0 : i32
    return %arg1, %arg0 : i32, i32
  }
  func.func @transform_6(%arg0: i32, %arg1: i32) -> (i32, i32) {
    %c0_i32 = arith.constant 0 : i32
    return %arg1, %arg0 : i32, i32
  }
}

</mosaic_0001>

<bundles_post_ra>
// kernel: custom-call
= control target key start
LH: loop header
LB: loop body
LE: loop exit
PB: predicated region body
PF: predicated region fallthrough
CT: control target
= control target key end

     0   :  { %2 = vsyncpa [#allocation0], 0  ;;  %s61_s0 = inlined_call_operand.hbm [shape: c64[2,4,16], index: 0, kind: input, shape index: {}]   ;;  %s62_s1 = inlined_call_operand.vmem [shape: f32[2,4,16], index: 1, kind: output, shape index: {}]  }
   0x1   :  { %s3_s8 = sshll.u32 %s62_s1, 4  ;;  %s9_s11 = scalar_lea.hbm %s61_s0, 128  ;;  %s4_s8 = int_to_ptr.vmem [resolvable:$true] %s3_s8 }
   0x2   :  { %p10_p0 = scmp.ne.s32.totalorder %s61_s0, %s9_s11  ;;  %s11_s16 = scalar_lea.hbm %s61_s0, 256 }
   0x3   :  { %p12_p1 = scmp.lt.u32.totalorder %s11_s16, %s9_s11  ;;  %p13_p2 = scmp.lt.u32.totalorder %s9_s11, %s61_s0 }
   0x5   :  { %p14_p3 = por %p13_p2, %p12_p1 }
   0x7   :  { %p15_p4 = pnand %p14_p3, %p10_p0 }
   0x9   :  { %18 = shalt.err (!%p15_p4)  }
   0xa   :  { %s19_s1 = scalar_lea.vmem %s4_s8, 128  ;;  %p24_p6 = scmp.lt.s32.totalorder %s4_s8, %s4_s8 }
   0xb   :  { %p20_p5 = scmp.ne.s32.totalorder %s4_s8, %s19_s1  ;;  %p25_p7 = scmp.lt.s32.totalorder %s19_s1, %s19_s1 }
   0xd   :  { %p26_p8 = por %p25_p7, %p24_p6 }
   0xf   :  { %p27_p9 = pnand %p26_p8, %p20_p5 }
  0x11   :  { %30 = shalt.err (!%p27_p9)  }
  0x12   :  { %6 = dma.hbm_to_vmem [thread:$0]  %s61_s0, 128, %s4_s8, [#allocation0] }
  0x13   :  { %31 = dma.done.wait [#allocation0], 128  }
  0x14   :  { %32 = vsyncadd [#allocation0], 4294967168 }
  0x15   :  { %8 = vsyncpa [#allocation0], 1 }

// kernel: custom-call.1
= control target key start
LH: loop header
LB: loop body
LE: loop exit
PB: predicated region body
PF: predicated region fallthrough
CT: control target
= control target key end

     0   :  { %s59_s0 = inlined_call_operand.hbm [shape: c64[2,4,16], index: 0, kind: input, shape index: {}]   ;;  %s60_s1 = inlined_call_operand.vmem [shape: f32[2,4,16], index: 1, kind: output, shape index: {}]  }
   0x1   :  { %s2_s8 = scalar_lea.hbm %s59_s0, 128 }
   0x2   :  { %3 = vsyncpa [#allocation0], 0  ;;  %s4_s11 = sshll.u32 %s60_s1, 4  ;;  %s34_s14 = scalar_lea.hbm %s59_s0, 256  ;;  %s5_s11 = int_to_ptr.vmem [resolvable:$true] %s4_s11 }
   0x3   :  { %p11_p0 = scmp.ne.s32.totalorder %s2_s8, %s34_s14  ;;  %p13_p1 = scmp.lt.u32.totalorder %s2_s8, %s59_s0 }
   0x4   :  { %p14_p2 = scmp.lt.u32.totalorder %s34_s14, %s34_s14  ;;  %p16_p4 = scmp.lt.u32.totalorder %s34_s14, %s2_s8 }
   0x6   :  { %p15_p3 = por %p14_p2, %p13_p1 }
   0x8   :  { %p17_p5 = por %p16_p4, %p15_p3 }
   0xa   :  { %p18_p6 = pnand %p17_p5, %p11_p0 }
   0xc   :  { %21 = shalt.err (!%p18_p6)  }
   0xd   :  { %s22_s17 = scalar_lea.vmem %s5_s11, 128  ;;  %p27_p8 = scmp.lt.s32.totalorder %s5_s11, %s5_s11 }
   0xe   :  { %p23_p7 = scmp.ne.s32.totalorder %s5_s11, %s22_s17  ;;  %p28_p9 = scmp.lt.s32.totalorder %s22_s17, %s22_s17 }
  0x10   :  { %p29_p10 = por %p28_p9, %p27_p8 }
  0x12   :  { %p30_p11 = pnand %p29_p10, %p23_p7 }
  0x14   :  { %33 = shalt.err (!%p30_p11)  }
  0x15   :  { %7 = dma.hbm_to_vmem [thread:$0]  %s2_s8, 128, %s5_s11, [#allocation0] }
  0x16   :  { %35 = dma.done.wait [#allocation0], 128  }
  0x17   :  { %36 = vsyncadd [#allocation0], 4294967168 }
  0x18   :  { %9 = vsyncpa [#allocation0], 1 }

// kernel: custom-call.2
= control target key start
LH: loop header
LB: loop body
LE: loop exit
PB: predicated region body
PF: predicated region fallthrough
CT: control target
= control target key end

     0   :  { %s126_s0 = inlined_call_operand.vmem [shape: f32[2,80], index: 0, kind: input, shape index: {}]   ;;  %s127_s1 = inlined_call_operand.vmem [shape: f32[2,80], index: 1, kind: input, shape index: {}]   ;;  %s128_s2 = inlined_call_operand.hbm [shape: c64[2,80], index: 2, kind: output, shape index: {}]  }
   0x1   :  { %s87_s11 = scalar_lea.hbm %s128_s2, 32 }
   0x2   :  { %4 = vsyncpa [#allocation0], 0  ;;  %s5_s14 = sshll.u32 %s126_s0, 4  ;;  %s6_s14 = int_to_ptr.vmem [resolvable:$true] %s5_s14 }
   0x3   :  { %s18_s15 = scalar_lea.vmem %s6_s14, 32  ;;  %p23_p1 = scmp.lt.s32.totalorder %s6_s14, %s6_s14 }
   0x4   :  { %p19_p0 = scmp.ne.s32.totalorder %s6_s14, %s18_s15  ;;  %p24_p2 = scmp.lt.s32.totalorder %s18_s15, %s18_s15 }
   0x6   :  { %p25_p3 = por %p24_p2, %p23_p1 }
   0x8   :  { %p26_p4 = pnand %p25_p3, %p19_p0 }
   0xa   :  { %29 = shalt.err (!%p26_p4)  }
   0xb   :  { %p31_p5 = scmp.ne.s32.totalorder %s128_s2, %s87_s11  ;;  %s32_s0 = scalar_lea.hbm %s128_s2, 64 }
   0xc   :  { %p33_p6 = scmp.lt.u32.totalorder %s32_s0, %s87_s11  ;;  %p34_p7 = scmp.lt.u32.totalorder %s87_s11, %s128_s2 }
   0xe   :  { %p35_p8 = por %p34_p7, %p33_p6 }
  0x10   :  { %p36_p9 = pnand %p35_p8, %p31_p5 }
  0x12   :  { %39 = shalt.err (!%p36_p9)  }
  0x13   :  { %8 = dma.vmem_to_hbm [thread:$0]  %s6_s14, 32, %s128_s2, [#allocation0] }
  0x14   :  { %65 = dma.done.wait [#allocation0], 32  }
  0x15   :  { %66 = vsyncadd [#allocation0], 4294967264 }
  0x16   :  { %10 = vsyncpa [#allocation0], 1 }
  0x17   :  { %11 = vsyncpa [#allocation1], 0  ;;  %s12_s28 = sshll.u32 %s127_s1, 4  ;;  %s13_s28 = int_to_ptr.vmem [resolvable:$true] %s12_s28 }
  0x18   :  { %s40_s29 = scalar_lea.vmem %s13_s28, 32  ;;  %p45_p11 = scmp.lt.s32.totalorder %s13_s28, %s13_s28 }
  0x19   :  { %p41_p10 = scmp.ne.s32.totalorder %s13_s28, %s40_s29  ;;  %p46_p12 = scmp.lt.s32.totalorder %s40_s29, %s40_s29 }
  0x1b   :  { %p47_p13 = por %p46_p12, %p45_p11 }
  0x1d   :  { %p48_p0 = pnand %p47_p13, %p41_p10 }
  0x1f   :  { %51 = shalt.err (!%p48_p0)  }
  0x20   :  { %p53_p1 = scmp.ne.s32.totalorder %s87_s11, %s32_s0  ;;  %p56_p2 = scmp.lt.u32.totalorder %s32_s0, %s32_s0 }
  0x22   :  { %p57_p3 = por %p56_p2, %p34_p7 }
  0x24   :  { %p59_p4 = por %p57_p3, %p33_p6 }
  0x26   :  { %p60_p5 = pnand %p59_p4, %p53_p1 }
  0x28   :  { %63 = shalt.err (!%p60_p5)  }
  0x29   :  { %15 = dma.vmem_to_hbm [thread:$0]  %s13_s28, 32, %s87_s11, [#allocation1] }
  0x2a   :  { %67 = dma.done.wait [#allocation1], 32  }
  0x2b   :  { %68 = vsyncadd [#allocation1], 4294967264 }
  0x2c   :  { %17 = vsyncpa [#allocation1], 1 }

// kernel: ofdm_modulate.1
= control target key start
LH: loop header
LB: loop body
LE: loop exit
PB: predicated region body
PF: predicated region fallthrough
CT: control target
= control target key end

     0   :  { %s2181_s21 = smov 0   ;;  %s2183_s22 = smov 0   ;;  %s2355_s0 = inlined_call_operand.vmem [shape: f32[16,16], index: 0, kind: input, shape index: {}]   ;;  %s2356_s1 = inlined_call_operand.vmem [shape: f32[16,16], index: 1, kind: input, shape index: {}]   ;;  %s2357_s2 = inlined_call_operand.vmem [shape: f32[16,128], index: 2, kind: input, shape index: {}]   ;;  %s2358_s3 = inlined_call_operand.vmem [shape: f32[16,128], index: 3, kind: input, shape index: {}]   ;;  %s2359_s4 = inlined_call_operand.vmem [shape: f32[16,128], index: 4, kind: input, shape index: {}]   ;;  %s2360_s5 = inlined_call_operand.vmem [shape: f32[16,128], index: 5, kind: output, shape index: {0}]   ;;  %s2361_s6 = inlined_call_operand.vmem [shape: f32[16,128], index: 6, kind: output, shape index: {1}]  }
   0x1   :  { %s2185_s23 = smov 0  }
   0x2 LB: > { %s26_s24 = sadd.s32 1, %s2137_s22  ;;  %p1831_p0 = scmp.ge.s32.totalorder %s2141_s23, 1  ;;  %s2141_s23 = sphi %s2185_s23, %s17_s23   ;;  %s2137_s22 = sphi %s2183_s22, %s2363_s22   ;;  %s2133_s21 = sphi %s2181_s21, %s2362_s21  }
   0x3   : > { %p27_p1 = scmp.ge.s32.totalorder %s26_s24, 2  ;;  %p239_p2 = scmp.lt.s32.totalorder %s2141_s23, 3 }
   0x5   : > { %s2365_s24 = smov (%p27_p1, %s26_s24), 0  ;;  %p240_p3 = pnand %p1831_p0, %p239_p2 }
   0x6   : > { %v771_v0 = vld [vmem:[%s2358_s3] sm:$0xff] (!%p240_p3)  ;;  %v772_v1 = vld [vmem:[%s2358_s3 + $0x8] sm:$0xff] (!%p240_p3)  ;;  %v2143_v3 = vmov (!%p240_p3), 0.0|0.0   ;;  %p281_p4 = scmp.lt.s32.totalorder (!%p240_p3), %s2133_s21, 1  ;;  %vm2144_vm0 = vmmov (!%p240_p3), 0   ;;  %v2145_v9 = vmov (!%p240_p3), 0.0  }
   0x7   : > { %243 = sbr.rel (%p240_p3) target bundleno = 303 (0x12f), region = 40  ;;  %v306_v2 = vld [vmem:[%s2357_s2] sm:$0xff] (!%p240_p3)  ;;  %2036 = vmatprep.subr.bf16.mxu1 (!%p240_p3), %v2143_v3  ;;  %2018 = vmatprep.subr.bf16.mxu0 (!%p240_p3), %v2143_v3  ;;  %v777_v4 = vand.u32 (!%p240_p3), 4294901760, %v771_v0  ;;  %v780_v5 = vand.u32 (!%p240_p3), 4294901760, %v772_v1  ;;  %v307_v6 = vld [vmem:[%s2357_s2 + $0x8] sm:$0xff] (!%p240_p3)  ;;  %vm308_vm1 = vcmask (!%p240_p3), 130048  }
   0x8   : > { %v313_v7 = vand.u32 (!%p240_p3), 4294901760, %v306_v2  ;;  %v316_v8 = vand.u32 (!%p240_p3), 4294901760, %v307_v6  ;;  %1938 = vmatprep.mubr.msk.f32.mxu1 (!%p240_p3), %vm2144_vm0, %v2145_v9  ;;  %1896 = vmatprep.mubr.msk.f32.mxu0 (!%p240_p3), %vm2144_vm0, %v2145_v9  ;;  %v1237_v47 = vld [vmem:[%s2359_s4] sm:$0xff] (!%p240_p3)  ;;  %v1238_v48 = vld [vmem:[%s2359_s4 + $0x8] sm:$0xff] (!%p240_p3) }
   0x9   : > { %v2220_v10 = vpack.c.bf16 (!%p240_p3), %v780_v5, %v777_v4  ;;  %v2222_v11 = vsub.f32 (!%p240_p3), %v771_v0, %v777_v4  ;;  %v2224_v12 = vsub.f32 (!%p240_p3), %v772_v1, %v780_v5  ;;  %v1243_v49 = vand.u32 (!%p240_p3), 4294901760, %v1237_v47 }
   0xa   : > { %v2226_v13 = vsub.f32 (!%p240_p3), %v306_v2, %v313_v7  ;;  %v2229_v14 = vpack.c.bf16 (!%p240_p3), %v316_v8, %v313_v7  ;;  %v2231_v15 = vsub.f32 (!%p240_p3), %v307_v6, %v316_v8  ;;  %v1246_v50 = vand.u32 (!%p240_p3), 4294901760, %v1238_v48 }
   0xb   : > { %2038 = vmatpush3.bf16.msra.mxu1 (!%p240_p3), %v2220_v10  ;;  %v856_v16 = vand.u32 (!%p240_p3), 4294901760, %v2222_v11  ;;  %v863_v17 = vand.u32 (!%p240_p3), 4294901760, %v2224_v12  ;;  %v2043_v45 = vpack.c.bf16 (!%p240_p3), %v2224_v12, %v2222_v11  ;;  %v1321_v52 = vsub.f32 (!%p240_p3), %v1237_v47, %v1243_v49 }
   0xc   : > { %2020 = vmatpush3.bf16.msra.mxu0 (!%p240_p3), %v2229_v14  ;;  %v392_v18 = vand.u32 (!%p240_p3), 4294901760, %v2226_v13  ;;  %v399_v19 = vand.u32 (!%p240_p3), 4294901760, %v2231_v15  ;;  %2039 = vmatprep.subr.bf16.mxu1 (!%p240_p3), %v2143_v3  ;;  %v2025_v46 = vpack.c.bf16 (!%p240_p3), %v2231_v15, %v2226_v13  ;;  %v1328_v53 = vsub.f32 (!%p240_p3), %v1238_v48, %v1246_v50 }
   0xd   : > { %2021 = vmatprep.subr.bf16.mxu0 (!%p240_p3), %v2143_v3  ;;  %v857_v24 = vsub.f32 (!%p240_p3), %v2222_v11, %v856_v16  ;;  %v864_v25 = vsub.f32 (!%p240_p3), %v2224_v12, %v863_v17  ;;  %v2049_v51 = vpack.c.bf16 (!%p240_p3), %v863_v17, %v856_v16  ;;  %v1322_v56 = vand.u32 (!%p240_p3), 4294901760, %v1321_v52 }
   0xe   : > { %s2367_s21 = smov (!%p281_p4, %s2133_s21), 1  ;;  %v393_v28 = vsub.f32 %v2226_v13, %v392_v18  ;;  %v400_v29 = vsub.f32 %v2231_v15, %v399_v19  ;;  %v2031_v54 = vpack.c.bf16 %v399_v19, %v392_v18  ;;  %v1329_v57 = vand.u32 4294901760, %v1328_v53 }
   0xf   : > { %s2234_s9 = sshll.u32 %s2367_s21, 3  ;;  %v858_v32 = vand.u32 4294901760, %v857_v24  ;;  %v865_v33 = vand.u32 4294901760, %v864_v25  ;;  %v1323_v59 = vsub.f32 %v1321_v52, %v1322_v56  ;;  %v2055_v4 = vpack.c.bf16 %v1246_v50, %v1243_v49 }
  0x10   : > { %s288_s12 = scalar_lea.vmem %s2356_s1, %s2234_s9  ;;  %s284_s15 = scalar_lea.vmem %s2355_s0, %s2234_s9  ;;  %v394_v36 = vand.u32 4294901760, %v393_v28  ;;  %v401_v37 = vand.u32 4294901760, %v400_v29  ;;  %v1330_v60 = vsub.f32 %v1328_v53, %v1329_v57  ;;  %v2061_v6 = vpack.c.bf16 %v1328_v53, %v1321_v52 }
  0x11   : > { %v304_v20 = vld [vmem:[%s288_s12] sm:$0xff]  ;;  %v2040_v40 = vpack.c.bf16 %v865_v33, %v858_v32  ;;  %v1324_v62 = vand.u32 4294901760, %v1323_v59  ;;  %v2067_v7 = vpack.c.bf16 %v1329_v57, %v1322_v56  ;;  %s295_s25 = scalar_lea.vmem %s2360_s5, %s2234_s9  ;;  %s302_s28 = scalar_lea.vmem %s2361_s6, %s2234_s9 }
  0x12   : > { %v303_v21 = vld [vmem:[%s284_s15] sm:$0xff]  ;;  %v774_v22 = vsel %vm308_vm1, %v304_v20, 0  ;;  %v2022_v43 = vpack.c.bf16 %v401_v37, %v394_v36  ;;  %v1331_v63 = vand.u32 4294901760, %v1330_v60 }
  0x13   : > { %v305_v23 = vadd.f32 %v304_v20, %v303_v21  ;;  %v2258_v26 = vand.u32 4294901760, %v774_v22  ;;  %v1240_v55 = vsel %vm308_vm1, %v303_v21, 0 }
  0x14   : > { %v1309_v58 = vand.u32 4294901760, %v1240_v55  ;;  %v2058_v1 = vpack.c.bf16 %v1331_v63, %v1324_v62 }
  0x15   : > { %v310_v27 = vsel %vm308_vm1, %v305_v23, 0  ;;  %v844_v30 = vsub.f32 %v774_v22, %v2258_v26 }
  0x16   : > { %v2264_v31 = vand.u32 4294901760, %v310_v27  ;;  %v1310_v61 = vsub.f32 %v1240_v55, %v1309_v58 }
  0x17   : > { %v845_v34 = vand.u32 4294901760, %v844_v30 }
  0x18   : > { %v380_v35 = vsub.f32 %v310_v27, %v2264_v31  ;;  %v1311_v0 = vand.u32 4294901760, %v1310_v61 }
  0x19   : > { %v846_v38 = vsub.f32 %v844_v30, %v845_v34 }
  0x1a   : > { %v381_v39 = vand.u32 4294901760, %v380_v35  ;;  %v1312_v2 = vsub.f32 %v1310_v61, %v1311_v0 }
  0x1b   : > { %v847_v41 = vand.u32 4294901760, %v846_v38 }
  0x1c   : > { %v382_v42 = vsub.f32 %v380_v35, %v381_v39  ;;  %v1313_v5 = vand.u32 4294901760, %v1312_v2 }
  0x1d   : > { %1939 = vmatmul.mubr.f32.vlgmr.msra.gmra.mrb[0].mxu1 %v847_v41 }
  0x1e   : > { %v383_v44 = vand.u32 4294901760, %v382_v42  ;;  %2041 = vmatpush3.bf16.msra.mxu1 %v2040_v40  ;;  %1945 = vmatprep.mubr.msk.f32.mxu1 %vm2144_vm0, %v2145_v9 }
  0x1f   : > { %2042 = vmatprep.subr.bf16.mxu1 %v2143_v3 }
  0x20   : > { %1897 = vmatmul.mubr.f32.vlgmr.msra.gmra.mrb[0].mxu0 %v383_v44 }
  0x21   : > { %2023 = vmatpush3.bf16.msra.mxu0 %v2022_v43  ;;  %1903 = vmatprep.mubr.msk.f32.mxu0 %vm2144_vm0, %v2145_v9 }
  0x22   : > { %2024 = vmatprep.subr.bf16.mxu0 %v2143_v3 }
  0x25   : > { %1946 = vmatmul.mubr.f32.vlgmr.msra.gmra.mrb[0].mxu1 %v2258_v26 }
  0x26   : > { %2044 = vmatpush3.bf16.msra.mxu1 %v2043_v45  ;;  %1952 = vmatprep.mubr.msk.f32.mxu1 %vm2144_vm0, %v2145_v9 }
  0x27   : > { %2045 = vmatprep.subr.bf16.mxu1 %v2143_v3 }
  0x28   : > { %1904 = vmatmul.mubr.f32.vlgmr.msra.gmra.mrb[0].mxu0 %v2264_v31 }
  0x29   : > { %2026 = vmatpush3.bf16.msra.mxu0 %v2025_v46  ;;  %1910 = vmatprep.mubr.msk.f32.mxu0 %vm2144_vm0, %v2145_v9 }
  0x2a   : > { %2027 = vmatprep.subr.bf16.mxu0 %v2143_v3 }
  0x2d   : > { %1953 = vmatmul.mubr.f32.vlgmr.msra.gmra.mrb[0].mxu1 %v844_v30 }
  0x2e   : > { %2047 = vmatpush3.bf16.msra.mxu1 %v2220_v10  ;;  %1959 = vmatprep.mubr.msk.f32.mxu1 %vm2144_vm0, %v2145_v9 }
  0x2f   : > { %2048 = vmatprep.subr.bf16.mxu1 %v2143_v3 }
  0x30   : > { %1911 = vmatmul.mubr.f32.vlgmr.msra.gmra.mrb[0].mxu0 %v380_v35 }
  0x31   : > { %2029 = vmatpush3.bf16.msra.mxu0 %v2229_v14  ;;  %1917 = vmatprep.mubr.msk.f32.mxu0 %vm2144_vm0, %v2145_v9 }
  0x32   : > { %2030 = vmatprep.subr.bf16.mxu0 %v2143_v3 }
  0x35   : > { %1960 = vmatmul.mubr.f32.vlgmr.msra.gmra.mrb[0].mxu1 %v845_v34 }
  0x36   : > { %2050 = vmatpush3.bf16.msra.mxu1 %v2049_v51  ;;  %1966 = vmatprep.mubr.msk.f32.mxu1 %vm2144_vm0, %v2145_v9 }
  0x37   : > { %2051 = vmatprep.subr.bf16.mxu1 %v2143_v3 }
  0x38   : > { %1918 = vmatmul.mubr.f32.vlgmr.msra.gmra.mrb[0].mxu0 %v381_v39 }
  0x39   : > { %2032 = vmatpush3.bf16.msra.mxu0 %v2031_v54  ;;  %1924 = vmatprep.mubr.msk.f32.mxu0 %vm2144_vm0, %v2145_v9 }
  0x3a   : > { %2033 = vmatprep.subr.bf16.mxu0 %v2143_v3 }
  0x3d   : > { %1967 = vmatmul.mubr.f32.vlgmr.msra.gmra.mrb[0].mxu1 %v2258_v26 }
  0x3e   : > { %2053 = vmatpush3.bf16.msra.mxu1 %v2220_v10  ;;  %1973 = vmatprep.mubr.msk.f32.mxu1 %vm2144_vm0, %v2145_v9 }
  0x3f   : > { %2057 = vmatprep.subr.bf16.mxu1 %v2143_v3 }
  0x40   : > { %1925 = vmatmul.mubr.f32.vlgmr.msra.gmra.mrb[0].mxu0 %v2264_v31 }
  0x41   : > { %2035 = vmatpush3.bf16.msra.mxu0 %v2229_v14  ;;  %1931 = vmatprep.mubr.msk.f32.mxu0 %vm2144_vm0, %v2145_v9 }
  0x42   : > { %2054 = vmatprep.subr.bf16.mxu0 %v2143_v3 }
  0x45   : > { %1974 = vmatmul.mubr.f32.vlgmr.msra.gmra.mrb[0].mxu1 %v2258_v26 }
  0x46   : > { %2059 = vmatpush3.bf16.msra.mxu1 %v2058_v1  ;;  %1987 = vmatprep.mubr.msk.f32.mxu1 %vm2144_vm0, %v2145_v9 }
  0x47   : > { %2063 = vmatprep.subr.bf16.mxu1 %v2143_v3 }
  0x48   : > { %1932 = vmatmul.mubr.f32.vlgmr.msra.gmra.mrb[0].mxu0 %v2264_v31 }
  0x49   : > { %2056 = vmatpush3.bf16.msra.mxu0 %v2055_v4  ;;  %1980 = vmatprep.mubr.msk.f32.mxu0 %vm2144_vm0, %v2145_v9 }
  0x4a   : > { %2060 = vmatprep.subr.bf16.mxu0 %v2143_v3  ;;  %1988 = vmatmul.mubr.f32.vlgmr.msra.gmra.mrb[2].mxu1 %v1309_v58 }
  0x4b   : > { %2065 = vmatpush3.bf16.msra.mxu1 %v2055_v4  ;;  %2001 = vmatprep.mubr.msk.f32.mxu1 %vm2144_vm0, %v2145_v9 }
  0x4c   : > { %1981 = vmatmul.mubr.f32.vlgmr.msra.gmra.mrb[2].mxu0 %v1313_v5  ;;  %2069 = vmatprep.subr.bf16.mxu1 %v2143_v3 }
  0x4d   : > { %2062 = vmatpush3.bf16.msra.mxu0 %v2061_v6  ;;  %1994 = vmatprep.mubr.msk.f32.mxu0 %vm2144_vm0, %v2145_v9 }
  0x4e   : > { %2066 = vmatprep.subr.bf16.mxu0 %v2143_v3  ;;  %2002 = vmatmul.mubr.f32.vlgmr.msra.gmra.mrb[4].mxu1 %v1311_v0 }
  0x4f   : > { %2071 = vmatpush3.bf16.msra.mxu1 %v2055_v4  ;;  %2015 = vmatprep.mubr.msk.f32.mxu1 %vm2144_vm0, %v2145_v9 }
  0x50   : > { %1995 = vmatmul.mubr.f32.vlgmr.msra.gmra.mrb[4].mxu0 %v1310_v61 }
  0x51   : > { %2068 = vmatpush3.bf16.msra.mxu0 %v2067_v7  ;;  %2008 = vmatprep.mubr.msk.f32.mxu0 %vm2144_vm0, %v2145_v9 }
  0x52   : > { %2016 = vmatmul.mubr.f32.vlgmr.msra.gmra.mrb[6].mxu1 %v1309_v58 }
  0x54   : > { %2009 = vmatmul.mubr.f32.vlgmr.msra.gmra.mrb[6].mxu0 %v1309_v58 }
 0x118   : > { %v1231_v8 = vpop.f32.mrb[0].mxu1 }
 0x119   : > { %v1975_v10 = vpop.f32.mrb[1].mxu1 }
 0x11b   : > { %v767_v11 = vpop.f32.mrb[0].mxu0 }
 0x11c   : > { %v1235_v3 = vsub.f32 %v767_v11, %v1231_v8  ;;  %v1933_v12 = vpop.f32.mrb[1].mxu0 }
 0x11d   : > { %v1396_v13 = vpop.f32.mrb[2].mxu1 }
 0x11e   : > { %1236 = vst [vmem:[%s295_s25] sm:$0xff] %v1235_v3  ;;  %v1989_v14 = vpop.f32.mrb[3].mxu1 }
 0x11f   : > { %v1315_v15 = vpop.f32.mrb[2].mxu0 }
 0x120   : > { %v1397_v16 = vadd.f32 %v1396_v13, %v1315_v15  ;;  %v1982_v17 = vpop.f32.mrb[3].mxu0 }
 0x121   : > { %v1547_v18 = vpop.f32.mrb[4].mxu1 }
 0x122   : > { %v2003_v9 = vpop.f32.mrb[5].mxu1 }
 0x123   : > { %v1472_v19 = vpop.f32.mrb[4].mxu0 }
 0x124   : > { %v1473_v20 = vadd.f32 %v1472_v19, %v1397_v16  ;;  %v1996_v21 = vpop.f32.mrb[5].mxu0 }
 0x125   : > { %v1697_v22 = vpop.f32.mrb[6].mxu1 }
 0x126   : > { %v1548_v23 = vadd.f32 %v1547_v18, %v1473_v20  ;;  %v2017_v24 = vpop.f32.mrb[7].mxu1 }
 0x127   : > { %v1624_v25 = vpop.f32.mrb[6].mxu0 }
 0x128   : > { %v1625_v26 = vadd.f32 %v1624_v25, %v1548_v23  ;;  %v2010_v27 = vpop.f32.mrb[7].mxu0 }
 0x12a   : > { %v1698_v28 = vadd.f32 %v1697_v22, %v1625_v26 }
 0x12c   : > { %v1701_v29 = vadd.f32 %v1698_v28, %v767_v11 }
 0x12e   : > { %1702 = vst [vmem:[%s302_s28] sm:$0xff] %v1701_v29 }
 0x12f PF: > { %s17_s23 = sadd.s32 1, %s2141_s23   ;;  %s2362_s21 = smov %s2137_s22 }
 0x130   : > { %p14_p5 = scmp.ge.s32.totalorder %s17_s23, 4   ;;  %s2363_s22 = smov %s2365_s24 }
 0x132   :  { %16 = sbr.rel (!%p14_p5) target bundleno = 2 (0x2), region = 85 }

</bundles_post_ra>
